<compile_context>
chip_gen: v7x
topology: tpu7x:2x2x1
jax: 0.10.0
libtpu: 0.0.40
codegen_flags: <defaults>
</compile_context>

<pallas_src>
import functools

import jax
import jax.numpy as jnp
import numpy as np
from jax.experimental import pallas as pl
from jax.experimental.pallas import tpu as pltpu


def _round_up(v, m):
    return ((v + m - 1) // m) * m


# ----------------------------------------------------------------------------
# Parameter construction (deterministic, mirrors RingAttractor.__init__)
# ----------------------------------------------------------------------------
def create_distance_weights(N, scale=2.5e-05, lambda_decay=0.9):
    """w_{m,n} = scale * exp(-d(m,n)/lambda), d = circular distance."""
    idx = np.arange(N)
    diff = np.abs(idx[:, None] - idx[None, :])
    d = np.minimum(diff, N - diff)
    return (scale * np.exp(-d / lambda_decay)).astype(np.float32)


# ----------------------------------------------------------------------------
# Pallas kernel: whole sequence, single invocation, no grid.
# ----------------------------------------------------------------------------
def ring_attractor_kernel(x_ref, wih_ref, whh_ref, out_ref, *,
                          seq_len, batch_p, beta):
    # x_ref:   (S*Bp, Dp)  zero-padded, time-major flattened input
    # wih_ref: (Dp, Np)    (W_ih^T) / tau, zero-padded
    # whh_ref: (Np, Np)    W_hh^T, zero-padded
    # out_ref: (S*Bp, Np)  beta * h_t; each row-block written exactly once
    np_ = whh_ref.shape[1]

    # Hoisted input projection: one lane-dense MXU pass for all timesteps.
    # u_all stays live in vregs (S*Bp=64 x Np=128 f32 -> 8 vregs at test size).
    u_all = jnp.dot(x_ref[...], wih_ref[...],
                    preferred_element_type=jnp.float32)
    whh = whh_ref[...]

    h = jnp.zeros((batch_p, np_), jnp.float32)
    for t in range(seq_len):              # static unroll; all offsets static
        lo = t * batch_p
        pre = u_all[lo:lo + batch_p, :] + jnp.dot(
            h, whh, preferred_element_type=jnp.float32)
        h = jnp.tanh(pre)                 # EUP; padded lanes stay exactly 0
        out_ref[lo:lo + batch_p, :] = h * beta   # beta folded into the store


# ----------------------------------------------------------------------------
# One-time constructor: all weight prep (transpose, 1/tau fold, zero-pad) is
# hoisted here; the returned jitted forward only pads x and calls the kernel.
# ----------------------------------------------------------------------------
def make_ring_attractor(w_ih, w_hh, tau, beta, *, seq_len, batch, input_dim):
    N = int(np.asarray(w_hh).shape[0])
    D = int(input_dim)
    S, B = int(seq_len), int(batch)

    Bp = _round_up(B, 8)       # sublane-dense batch
    Dp = _round_up(D, 128)     # lane-dense contraction dim
    Np = _round_up(N, 128)     # lane-dense hidden dim (MXU-native tile)

    # Host-side one-time prep: fold 1/tau, transpose, zero-pad.
    wih_np = np.zeros((Dp, Np), np.float32)
    wih_np[:D, :N] = np.asarray(w_ih, np.float32).T * (1.0 / float(tau))
    whh_np = np.zeros((Np, Np), np.float32)
    whh_np[:N, :N] = np.asarray(w_hh, np.float32).T
    wih_p = jnp.asarray(wih_np)
    whh_p = jnp.asarray(whh_np)

    kernel = functools.partial(ring_attractor_kernel,
                               seq_len=S, batch_p=Bp, beta=float(beta))

    call = pl.pallas_call(
        kernel,
        out_shape=jax.ShapeDtypeStruct((S * Bp, Np), jnp.float32),
        in_specs=[
            pl.BlockSpec(memory_space=pltpu.VMEM),   # x (padded, flattened)
            pl.BlockSpec(memory_space=pltpu.VMEM),   # W_ih^T / tau (padded)
            pl.BlockSpec(memory_space=pltpu.VMEM),   # W_hh^T (padded)
        ],
        out_specs=pl.BlockSpec(memory_space=pltpu.VMEM),
    )

    @jax.jit
    def forward(x):
        """x: (S, B, D) float32 -> beta * h: (S, B, N) float32."""
        x_p = jnp.pad(jnp.asarray(x, jnp.float32),
                      ((0, 0), (0, Bp - B), (0, Dp - D)))
        out_p = call(x_p.reshape(S * Bp, Dp), wih_p, whh_p)
        return out_p.reshape(S, Bp, Np)[:, :B, :N]

    return forward


# ----------------------------------------------------------------------------
# Pure-JAX reference (for correctness check)
# ----------------------------------------------------------------------------
def ring_attractor_reference(x, w_ih, w_hh, tau, beta):
    x = (1.0 / tau) * x

    def step(h, x_t):
        h_new = jnp.tanh(x_t @ w_ih.T + h @ w_hh.T)
        return h_new, h_new

    h0 = jnp.zeros((x.shape[1], w_hh.shape[0]), jnp.float32)
    _, out = jax.lax.scan(step, h0, x)
    return beta * out


if __name__ == "__main__":
    # Shapes: input_dim == num_excitatory == N (required by the module's
    # weight_ih_l0 assignment), seq=8, batch=2.
    SEQ, BATCH, N = 8, 2, 32
    TAU, BETA, LAMBDA = 10.0, 10.0, 0.9

    key = jax.random.PRNGKey(0)
    x = jax.random.normal(key, (SEQ, BATCH, N), dtype=jnp.float32)

    w_fixed = create_distance_weights(N, lambda_decay=LAMBDA)    # V (fixed)
    w_hidden = create_distance_weights(N, lambda_decay=LAMBDA)   # U (learnable)

    forward = make_ring_attractor(w_fixed, w_hidden, TAU, BETA,
                                  seq_len=SEQ, batch=BATCH, input_dim=N)

    out = jax.block_until_ready(forward(x))

    ref = ring_attractor_reference(x, jnp.asarray(w_fixed),
                                   jnp.asarray(w_hidden), TAU, BETA)
    np.testing.assert_allclose(np.asarray(out), np.asarray(ref),
                               rtol=1e-5, atol=1e-6)

    print("KERNEL_OK")
</pallas_src>

<mosaic_0001>
module attributes {stable_mosaic.version = 11 : i64} {
  func.func @ring_attractor_kernel(%arg0: memref<64x128xf32, #tpu.memory_space<vmem>>, %arg1: memref<128x128xf32, #tpu.memory_space<vmem>>, %arg2: memref<128x128xf32, #tpu.memory_space<vmem>>, %arg3: memref<64x128xf32, #tpu.memory_space<vmem>>) attributes {dimension_semantics = [], scalar_prefetch = 0 : i64, scratch_operands = 0 : i64, tpu.core_type = #tpu.core_type<tc>} {
    %c0 = arith.constant 0 : index
    %c0_0 = arith.constant 0 : index
    %0 = vector.load %arg0[%c0, %c0_0] : memref<64x128xf32, #tpu.memory_space<vmem>>, vector<64x128xf32>
    %c0_1 = arith.constant 0 : index
    %c0_2 = arith.constant 0 : index
    %1 = vector.load %arg1[%c0_1, %c0_2] : memref<128x128xf32, #tpu.memory_space<vmem>>, vector<128x128xf32>
    %cst = arith.constant dense<0.000000e+00> : vector<64x128xf32>
    %2 = tpu.matmul %0, %1, %cst {dimension_numbers = #tpu.dot_dimension_numbers<[1], [0], [0], [1], [0, 0, 1, 1], [], []>} : vector<64x128xf32>, vector<128x128xf32>, vector<64x128xf32> -> vector<64x128xf32>
    %c0_3 = arith.constant 0 : index
    %c0_4 = arith.constant 0 : index
    %3 = vector.load %arg2[%c0_3, %c0_4] : memref<128x128xf32, #tpu.memory_space<vmem>>, vector<128x128xf32>
    %cst_5 = arith.constant 0.000000e+00 : f32
    %4 = vector.broadcast %cst_5 : f32 to vector<8x128xf32>
    %5 = vector.extract_strided_slice %2 {offsets = [0, 0], sizes = [8, 128], strides = [1, 1]} : vector<64x128xf32> to vector<8x128xf32>
    %cst_6 = arith.constant dense<0.000000e+00> : vector<8x128xf32>
    %6 = tpu.matmul %4, %3, %cst_6 {dimension_numbers = #tpu.dot_dimension_numbers<[1], [0], [0], [1], [0, 0, 1, 1], [], []>} : vector<8x128xf32>, vector<128x128xf32>, vector<8x128xf32> -> vector<8x128xf32>
    %7 = arith.addf %5, %6 : vector<8x128xf32>
    %8 = math.tanh %7 : vector<8x128xf32>
    %cst_7 = arith.constant 1.000000e+01 : f32
    %9 = vector.broadcast %cst_7 : f32 to vector<8x128xf32>
    %10 = arith.mulf %8, %9 : vector<8x128xf32>
    %c0_8 = arith.constant 0 : index
    %c0_9 = arith.constant 0 : index
    %11 = vector.load %arg3[%c0_8, %c0_9] : memref<64x128xf32, #tpu.memory_space<vmem>>, vector<8x128xf32>
    tpu.vector_store %arg3[%c0_8, %c0_9], %10 {strides = array<i32>} : memref<64x128xf32, #tpu.memory_space<vmem>>, vector<8x128xf32>,
    %12 = vector.extract_strided_slice %2 {offsets = [8, 0], sizes = [8, 128], strides = [1, 1]} : vector<64x128xf32> to vector<8x128xf32>
    %cst_10 = arith.constant dense<0.000000e+00> : vector<8x128xf32>
    %13 = tpu.matmul %8, %3, %cst_10 {dimension_numbers = #tpu.dot_dimension_numbers<[1], [0], [0], [1], [0, 0, 1, 1], [], []>} : vector<8x128xf32>, vector<128x128xf32>, vector<8x128xf32> -> vector<8x128xf32>
    %14 = arith.addf %12, %13 : vector<8x128xf32>
    %15 = math.tanh %14 : vector<8x128xf32>
    %cst_11 = arith.constant 1.000000e+01 : f32
    %16 = vector.broadcast %cst_11 : f32 to vector<8x128xf32>
    %17 = arith.mulf %15, %16 : vector<8x128xf32>
    %c8 = arith.constant 8 : index
    %c0_12 = arith.constant 0 : index
    %18 = vector.load %arg3[%c8, %c0_12] : memref<64x128xf32, #tpu.memory_space<vmem>>, vector<8x128xf32>
    tpu.vector_store %arg3[%c8, %c0_12], %17 {strides = array<i32>} : memref<64x128xf32, #tpu.memory_space<vmem>>, vector<8x128xf32>,
    %19 = vector.extract_strided_slice %2 {offsets = [16, 0], sizes = [8, 128], strides = [1, 1]} : vector<64x128xf32> to vector<8x128xf32>
    %cst_13 = arith.constant dense<0.000000e+00> : vector<8x128xf32>
    %20 = tpu.matmul %15, %3, %cst_13 {dimension_numbers = #tpu.dot_dimension_numbers<[1], [0], [0], [1], [0, 0, 1, 1], [], []>} : vector<8x128xf32>, vector<128x128xf32>, vector<8x128xf32> -> vector<8x128xf32>
    %21 = arith.addf %19, %20 : vector<8x128xf32>
    %22 = math.tanh %21 : vector<8x128xf32>
    %cst_14 = arith.constant 1.000000e+01 : f32
    %23 = vector.broadcast %cst_14 : f32 to vector<8x128xf32>
    %24 = arith.mulf %22, %23 : vector<8x128xf32>
    %c16 = arith.constant 16 : index
    %c0_15 = arith.constant 0 : index
    %25 = vector.load %arg3[%c16, %c0_15] : memref<64x128xf32, #tpu.memory_space<vmem>>, vector<8x128xf32>
    tpu.vector_store %arg3[%c16, %c0_15], %24 {strides = array<i32>} : memref<64x128xf32, #tpu.memory_space<vmem>>, vector<8x128xf32>,
    %26 = vector.extract_strided_slice %2 {offsets = [24, 0], sizes = [8, 128], strides = [1, 1]} : vector<64x128xf32> to vector<8x128xf32>
    %cst_16 = arith.constant dense<0.000000e+00> : vector<8x128xf32>
    %27 = tpu.matmul %22, %3, %cst_16 {dimension_numbers = #tpu.dot_dimension_numbers<[1], [0], [0], [1], [0, 0, 1, 1], [], []>} : vector<8x128xf32>, vector<128x128xf32>, vector<8x128xf32> -> vector<8x128xf32>
    %28 = arith.addf %26, %27 : vector<8x128xf32>
    %29 = math.tanh %28 : vector<8x128xf32>
    %cst_17 = arith.constant 1.000000e+01 : f32
    %30 = vector.broadcast %cst_17 : f32 to vector<8x128xf32>
    %31 = arith.mulf %29, %30 : vector<8x128xf32>
    %c24 = arith.constant 24 : index
    %c0_18 = arith.constant 0 : index
    %32 = vector.load %arg3[%c24, %c0_18] : memref<64x128xf32, #tpu.memory_space<vmem>>, vector<8x128xf32>
    tpu.vector_store %arg3[%c24, %c0_18], %31 {strides = array<i32>} : memref<64x128xf32, #tpu.memory_space<vmem>>, vector<8x128xf32>,
    %33 = vector.extract_strided_slice %2 {offsets = [32, 0], sizes = [8, 128], strides = [1, 1]} : vector<64x128xf32> to vector<8x128xf32>
    %cst_19 = arith.constant dense<0.000000e+00> : vector<8x128xf32>
    %34 = tpu.matmul %29, %3, %cst_19 {dimension_numbers = #tpu.dot_dimension_numbers<[1], [0], [0], [1], [0, 0, 1, 1], [], []>} : vector<8x128xf32>, vector<128x128xf32>, vector<8x128xf32> -> vector<8x128xf32>
    %35 = arith.addf %33, %34 : vector<8x128xf32>
    %36 = math.tanh %35 : vector<8x128xf32>
    %cst_20 = arith.constant 1.000000e+01 : f32
    %37 = vector.broadcast %cst_20 : f32 to vector<8x128xf32>
    %38 = arith.mulf %36, %37 : vector<8x128xf32>
    %c32 = arith.constant 32 : index
    %c0_21 = arith.constant 0 : index
    %39 = vector.load %arg3[%c32, %c0_21] : memref<64x128xf32, #tpu.memory_space<vmem>>, vector<8x128xf32>
    tpu.vector_store %arg3[%c32, %c0_21], %38 {strides = array<i32>} : memref<64x128xf32, #tpu.memory_space<vmem>>, vector<8x128xf32>,
    %40 = vector.extract_strided_slice %2 {offsets = [40, 0], sizes = [8, 128], strides = [1, 1]} : vector<64x128xf32> to vector<8x128xf32>
    %cst_22 = arith.constant dense<0.000000e+00> : vector<8x128xf32>
    %41 = tpu.matmul %36, %3, %cst_22 {dimension_numbers = #tpu.dot_dimension_numbers<[1], [0], [0], [1], [0, 0, 1, 1], [], []>} : vector<8x128xf32>, vector<128x128xf32>, vector<8x128xf32> -> vector<8x128xf32>
    %42 = arith.addf %40, %41 : vector<8x128xf32>
    %43 = math.tanh %42 : vector<8x128xf32>
    %cst_23 = arith.constant 1.000000e+01 : f32
    %44 = vector.broadcast %cst_23 : f32 to vector<8x128xf32>
    %45 = arith.mulf %43, %44 : vector<8x128xf32>
    %c40 = arith.constant 40 : index
    %c0_24 = arith.constant 0 : index
    %46 = vector.load %arg3[%c40, %c0_24] : memref<64x128xf32, #tpu.memory_space<vmem>>, vector<8x128xf32>
    tpu.vector_store %arg3[%c40, %c0_24], %45 {strides = array<i32>} : memref<64x128xf32, #tpu.memory_space<vmem>>, vector<8x128xf32>,
    %47 = vector.extract_strided_slice %2 {offsets = [48, 0], sizes = [8, 128], strides = [1, 1]} : vector<64x128xf32> to vector<8x128xf32>
    %cst_25 = arith.constant dense<0.000000e+00> : vector<8x128xf32>
    %48 = tpu.matmul %43, %3, %cst_25 {dimension_numbers = #tpu.dot_dimension_numbers<[1], [0], [0], [1], [0, 0, 1, 1], [], []>} : vector<8x128xf32>, vector<128x128xf32>, vector<8x128xf32> -> vector<8x128xf32>
    %49 = arith.addf %47, %48 : vector<8x128xf32>
    %50 = math.tanh %49 : vector<8x128xf32>
    %cst_26 = arith.constant 1.000000e+01 : f32
    %51 = vector.broadcast %cst_26 : f32 to vector<8x128xf32>
    %52 = arith.mulf %50, %51 : vector<8x128xf32>
    %c48 = arith.constant 48 : index
    %c0_27 = arith.constant 0 : index
    %53 = vector.load %arg3[%c48, %c0_27] : memref<64x128xf32, #tpu.memory_space<vmem>>, vector<8x128xf32>
    tpu.vector_store %arg3[%c48, %c0_27], %52 {strides = array<i32>} : memref<64x128xf32, #tpu.memory_space<vmem>>, vector<8x128xf32>,
    %54 = vector.extract_strided_slice %2 {offsets = [56, 0], sizes = [8, 128], strides = [1, 1]} : vector<64x128xf32> to vector<8x128xf32>
    %cst_28 = arith.constant dense<0.000000e+00> : vector<8x128xf32>
    %55 = tpu.matmul %50, %3, %cst_28 {dimension_numbers = #tpu.dot_dimension_numbers<[1], [0], [0], [1], [0, 0, 1, 1], [], []>} : vector<8x128xf32>, vector<128x128xf32>, vector<8x128xf32> -> vector<8x128xf32>
    %56 = arith.addf %54, %55 : vector<8x128xf32>
    %57 = math.tanh %56 : vector<8x128xf32>
    %cst_29 = arith.constant 1.000000e+01 : f32
    %58 = vector.broadcast %cst_29 : f32 to vector<8x128xf32>
    %59 = arith.mulf %57, %58 : vector<8x128xf32>
    %c56 = arith.constant 56 : index
    %c0_30 = arith.constant 0 : index
    %60 = vector.load %arg3[%c56, %c0_30] : memref<64x128xf32, #tpu.memory_space<vmem>>, vector<8x128xf32>
    tpu.vector_store %arg3[%c56, %c0_30], %59 {strides = array<i32>} : memref<64x128xf32, #tpu.memory_space<vmem>>, vector<8x128xf32>,
    return
  }
}

</mosaic_0001>

<bundles_post_ra>
// kernel: forward.1
= control target key start
LH: loop header
LB: loop body
LE: loop exit
PB: predicated region body
PF: predicated region fallthrough
CT: control target
= control target key end

     0   :  { %8 = vsyncpa [#allocation3], 0  ;;  %s1836_s0 = inlined_call_operand.vmem [shape: f32[64,128], index: 0, kind: input, shape index: {}]   ;;  %s1837_s1 = inlined_call_operand.hbm [shape: f32[128,128], index: 1, kind: input, shape index: {}]   ;;  %s1838_s2 = inlined_call_operand.hbm [shape: f32[128,128], index: 2, kind: input, shape index: {}]   ;;  %s1839_s3 = inlined_call_operand.vmem [shape: f32[64,128], index: 3, kind: output, shape index: {}]  }
   0x1   :  { %9 = vsyncpa [#allocation5], 0  ;;  %s1564_s12 = smov [#allocation2]   ;;  %s1516_s16 = scalar_lea.hbm %s1837_s1, 2048 }
   0x2   :  { %s17_s13 = sshll.u32 %s1564_s12, 4  ;;  %p1517_p0 = scmp.ne.s32.totalorder %s1837_s1, %s1516_s16  ;;  %s18_s13 = int_to_ptr.vmem [resolvable:$true] %s17_s13 }
   0x3   :  { %p1520_p1 = scmp.lt.u32.totalorder %s1516_s16, %s1837_s1 }
   0x5   :  { %p1522_p2 = pnand %p1520_p1, %p1517_p0 }
   0x7   :  { %1525 = shalt.err (!%p1522_p2)
}
   0x8   :  { %s1526_s21 = scalar_lea.vmem %s18_s13, 2048  ;;  %p1531_p4 = scmp.lt.s32.totalorder %s18_s13, %s18_s13 }
   0x9   :  { %p1527_p3 = scmp.ne.s32.totalorder %s18_s13, %s1526_s21  ;;  %p1532_p5 = scmp.lt.s32.totalorder %s1526_s21, %s1526_s21 }
   0xb   :  { %p1533_p6 = por %p1532_p5, %p1531_p4 }
   0xd   :  { %p1534_p7 = pnand %p1533_p6, %p1527_p3 }
   0xf   :  { %1537 = shalt.err (!%p1534_p7)
}
  0x10   :  { %s1565_s22 = smov 128   ;;  %s1566_s23 = smov 8  }
  0x11   :  { %23 = dma.hbm_to_vmem [thread:$0]  %s1837_s1, 2048, %s18_s13, [#allocation3], %s1565_s22, %s1565_s22, %s1566_s23  }
  0x12   :  { %s1567_s26 = smov [#allocation4]   ;;  %s1538_s30 = scalar_lea.hbm %s1838_s2, 2048 }
  0x13   :  { %s29_s27 = sshll.u32 %s1567_s26, 4  ;;  %p1539_p8 = scmp.ne.s32.totalorder %s1838_s2, %s1538_s30  ;;  %s30_s27 = int_to_ptr.vmem [resolvable:$true] %s29_s27 }
  0x14   :  { %p1542_p9 = scmp.lt.u32.totalorder %s1538_s30, %s1838_s2 }
  0x16   :  { %p1544_p10 = pnand %p1542_p9, %p1539_p8 }
  0x18   :  { %1547 = shalt.err (!%p1544_p10)
}
  0x19   :  { %s1548_s8 = scalar_lea.vmem %s30_s27, 2048  ;;  %p1553_p12 = scmp.lt.s32.totalorder %s30_s27, %s30_s27 }
  0x1a   :  { %p1549_p11 = scmp.ne.s32.totalorder %s30_s27, %s1548_s8  ;;  %p1554_p13 = scmp.lt.s32.totalorder %s1548_s8, %s1548_s8 }
  0x1c   :  { %p1555_p0 = por %p1554_p13, %p1553_p12 }
  0x1e   :  { %p1556_p1 = pnand %p1555_p0, %p1549_p11 }
  0x20   :  { %1559 = shalt.err (!%p1556_p1)
}
  0x21   :  { %35 = dma.hbm_to_vmem [thread:$0]  %s1838_s2, 2048, %s30_s27, [#allocation5], %s1565_s22, %s1565_s22, %s1566_s23  }
  0x22   :  { %1560 = dma.done.wait [#allocation3], 2048  }
  0x23   :  { %1561 = vsyncadd [#allocation3], 4294965248 }
  0x24   :  { %1562 = dma.done.wait [#allocation5], 2048  }
  0x25   :  { %1563 = vsyncadd [#allocation5], 4294965248  ;;  %v1568_v0 = vmov 0.0|0.0   ;;  %vm1569_vm0 = vmmov 0   ;;  %v1570_v1 = vmov 0.0   ;;  %v50_v2 = vld [vmem:[#allocation2] sm:$0xff] }
  0x26   :  { %1301 = vmatprep.subr.bf16.mxu1 %v1568_v0  ;;  %1021 = vmatprep.mubr.msk.f32.mxu1 %vm1569_vm0, %v1570_v1  ;;  %v51_v3 = vld [vmem:[#allocation2 + $0x8] sm:$0xff]  ;;  %v171_v4 = vld [vmem:[#allocation4] sm:$0xff]  ;;  %v52_v7 = vld [vmem:[#allocation2 + $0x10] sm:$0xff] }
  0x27   :  { %v1269_v5 = vpack.c.bf16 %v51_v3, %v50_v2  ;;  %v172_v6 = vld [vmem:[#allocation4 + $0x8] sm:$0xff]  ;;  %v53_v8 = vld [vmem:[#allocation2 + $0x18] sm:$0xff]  ;;  %v173_v11 = vld [vmem:[#allocation4 + $0x10] sm:$0xff] }
  0x28   :  { %v1618_v9 = vpack.c.bf16 %v172_v6, %v171_v4  ;;  %v1273_v10 = vpack.c.bf16 %v53_v8, %v52_v7  ;;  %v174_v12 = vld [vmem:[#allocation4 + $0x18] sm:$0xff]  ;;  %v54_v13 = vld [vmem:[#allocation2 + $0x20] sm:$0xff]  ;;  %v55_v14 = vld [vmem:[#allocation2 + $0x28] sm:$0xff] }
  0x29   :  { %1270 = vmatprep.subr.bf16.mxu0 %v1269_v5  ;;  %v1621_v15 = vpack.c.bf16 %v174_v12, %v173_v11  ;;  %v1277_v16 = vpack.c.bf16 %v55_v14, %v54_v13  ;;  %v175_v17 = vld [vmem:[#allocation4 + $0x20] sm:$0xff]  ;;  %v176_v18 = vld [vmem:[#allocation4 + $0x28] sm:$0xff]  ;;  %v56_v19 = vld [vmem:[#allocation2 + $0x30] sm:$0xff] }
  0x2a   :  { %1272 = vmatpush3.bf16.msra.mxu0 %v1269_v5  ;;  %1303 = vmatpush3.bf16.msra.mxu1 %v1618_v9  ;;  %v57_v20 = vld [vmem:[#allocation2 + $0x38] sm:$0xff]  ;;  %v1625_v21 = vpack.c.bf16 %v176_v18, %v175_v17  ;;  %v177_v23 = vld [vmem:[#allocation4 + $0x30] sm:$0xff]  ;;  %v58_v25 = vld [vmem:[#allocation2 + $0x40] sm:$0xff] }
  0x2b   :  { %1274 = vmatprep.subr.bf16.mxu0 %v1273_v10  ;;  %1304 = vmatprep.subr.bf16.mxu1 %v1568_v0  ;;  %v1281_v22 = vpack.c.bf16 %v57_v20, %v56_v19  ;;  %v178_v24 = vld [vmem:[#allocation4 + $0x38] sm:$0xff]  ;;  %v59_v26 = vld [vmem:[#allocation2 + $0x48] sm:$0xff]  ;;  %v42_v27 = vld [vmem:[%s1836_s0] sm:$0xff] }
  0x2c   :  { %977 = vmatprep.mubr.f32.mxu0 %v42_v27  ;;  %v1632_v28 = vpack.c.bf16 %v178_v24, %v177_v23  ;;  %v1285_v29 = vpack.c.bf16 %v59_v26, %v58_v25  ;;  %v179_v30 = vld [vmem:[#allocation4 + $0x40] sm:$0xff]  ;;  %v180_v31 = vld [vmem:[#allocation4 + $0x48] sm:$0xff]  ;;  %v60_v32 = vld [vmem:[#allocation2 + $0x50] sm:$0xff] }
  0x2d   :  { %v61_v33 = vld [vmem:[#allocation2 + $0x58] sm:$0xff]  ;;  %v1636_v34 = vpack.c.bf16 %v180_v31, %v179_v30  ;;  %v181_v36 = vld [vmem:[#allocation4 + $0x50] sm:$0xff]  ;;  %v62_v38 = vld [vmem:[#allocation2 + $0x60] sm:$0xff] }
  0x2e   :  { %1276 = vmatpush3.bf16.msra.mxu0 %v1273_v10  ;;  %1306 = vmatpush3.bf16.msra.mxu1 %v1621_v15  ;;  %v1289_v35 = vpack.c.bf16 %v61_v33, %v60_v32  ;;  %v182_v37 = vld [vmem:[#allocation4 + $0x58] sm:$0xff]  ;;  %v63_v39 = vld [vmem:[#allocation2 + $0x68] sm:$0xff]  ;;  %v183_v42 = vld [vmem:[#allocation4 + $0x60] sm:$0xff] }
  0x2f   :  { %1278 = vmatprep.subr.bf16.mxu0 %v1277_v16  ;;  %1307 = vmatprep.subr.bf16.mxu1 %v1568_v0  ;;  %v1640_v40 = vpack.c.bf16 %v182_v37, %v181_v36  ;;  %v1293_v41 = vpack.c.bf16 %v63_v39, %v62_v38  ;;  %v184_v43 = vld [vmem:[#allocation4 + $0x68] sm:$0xff]  ;;  %v64_v44 = vld [vmem:[#allocation2 + $0x70] sm:$0xff]  ;;  %v65_v45 = vld [vmem:[#allocation2 + $0x78] sm:$0xff] }
  0x30   :  { %v1644_v46 = vpack.c.bf16 %v184_v43, %v183_v42  ;;  %v1297_v47 = vpack.c.bf16 %v65_v45, %v64_v44  ;;  %v185_v48 = vld [vmem:[#allocation4 + $0x70] sm:$0xff]  ;;  %v186_v49 = vld [vmem:[#allocation4 + $0x78] sm:$0xff]  ;;  %v43_v51 = vld [vmem:[%s1836_s0 + $0x8] sm:$0xff] }
  0x31   :  { %v1648_v50 = vpack.c.bf16 %v186_v49, %v185_v48  ;;  %v44_v52 = vld [vmem:[%s1836_s0 + $0x10] sm:$0xff]  ;;  %v45_v53 = vld [vmem:[%s1836_s0 + $0x18] sm:$0xff]  ;;  %v46_v54 = vld [vmem:[%s1836_s0 + $0x20] sm:$0xff] }
  0x32   :  { %1280 = vmatpush3.bf16.msra.mxu0 %v1277_v16  ;;  %1309 = vmatpush3.bf16.msra.mxu1 %v1625_v21  ;;  %v47_v55 = vld [vmem:[%s1836_s0 + $0x28] sm:$0xff]  ;;  %v48_v56 = vld [vmem:[%s1836_s0 + $0x30] sm:$0xff]  ;;  %v49_v57 = vld [vmem:[%s1836_s0 + $0x38] sm:$0xff] }
  0x33   :  { %1282 = vmatprep.subr.bf16.mxu0 %v1281_v22  ;;  %1310 = vmatprep.subr.bf16.mxu1 %v1568_v0 }
  0x36   :  { %1284 = vmatpush3.bf16.msra.mxu0 %v1281_v22  ;;  %1312 = vmatpush3.bf16.msra.mxu1 %v1632_v28 }
  0x37   :  { %1286 = vmatprep.subr.bf16.mxu0 %v1285_v29  ;;  %1313 = vmatprep.subr.bf16.mxu1 %v1568_v0 }
  0x3a   :  { %1288 = vmatpush3.bf16.msra.mxu0 %v1285_v29  ;;  %1315 = vmatpush3.bf16.msra.mxu1 %v1636_v34 }
  0x3b   :  { %1290 = vmatprep.subr.bf16.mxu0 %v1289_v35  ;;  %1316 = vmatprep.subr.bf16.mxu1 %v1568_v0 }
  0x3e   :  { %1292 = vmatpush3.bf16.msra.mxu0 %v1289_v35  ;;  %1318 = vmatpush3.bf16.msra.mxu1 %v1640_v40 }
  0x3f   :  { %1294 = vmatprep.subr.bf16.mxu0 %v1293_v41  ;;  %1319 = vmatprep.subr.bf16.mxu1 %v1568_v0 }
  0x42   :  { %1296 = vmatpush3.bf16.msra.mxu0 %v1293_v41  ;;  %1321 = vmatpush3.bf16.msra.mxu1 %v1644_v46 }
  0x43   :  { %1298 = vmatprep.subr.bf16.mxu0 %v1297_v47  ;;  %1322 = vmatprep.subr.bf16.mxu1 %v1568_v0 }
  0x46   :  { %1300 = vmatpush3.bf16.msra.mxu0 %v1297_v47  ;;  %1324 = vmatpush3.bf16.msra.mxu1 %v1648_v50 }
  0x47   :  { %1325 = vmatprep.subr.bf16.mxu0 %v1568_v0  ;;  %1349 = vmatprep.subr.bf16.mxu1 %v1568_v0 }
  0x49   :  { %978 = vmatmul.mubr.f32.vlgmr.msra.gmra.mrb[0].mxu0 %v43_v51  ;;  %1022 = vmatmul.mubr.f32.vlgmr.msra.gmra.mrb[0].mxu1 %v1570_v1 }
  0x4a   :  { %1327 = vmatpush3.bf16.msra.mxu0 %v1618_v9  ;;  %1351 = vmatpush3.bf16.msra.mxu1 %v1618_v9 }
  0x4b   :  { %1328 = vmatprep.subr.bf16.mxu0 %v1568_v0  ;;  %1352 = vmatprep.subr.bf16.mxu1 %v1568_v0 }
  0x4c   :  { %1091 = vmatprep.mubr.msk.f32.mxu1 %vm1569_vm0, %v1570_v1  ;;  %980 = vmatprep.mubr.f32.mxu0 %v44_v52 }
  0x4d   :  { %981 = vmatmul.mubr.f32.gmra.mrb[2].mxu0 %v45_v53 }
  0x4e   :  { %1330 = vmatpush3.bf16.msra.mxu0 %v1621_v15  ;;  %1354 = vmatpush3.bf16.msra.mxu1 %v1621_v15 }
  0x4f   :  { %1331 = vmatprep.subr.bf16.mxu0 %v1568_v0  ;;  %1355 = vmatprep.subr.bf16.mxu1 %v1568_v0 }
  0x50   :  { %983 = vmatprep.mubr.f32.mxu0 %v46_v54 }
  0x51   :  { %984 = vmatmul.mubr.f32.gmra.mrb[4].mxu0 %v47_v55 }
  0x52   :  { %1333 = vmatpush3.bf16.msra.mxu0 %v1625_v21  ;;  %1357 = vmatpush3.bf16.msra.mxu1 %v1625_v21 }
  0x53   :  { %1334 = vmatprep.subr.bf16.mxu0 %v1568_v0  ;;  %1358 = vmatprep.subr.bf16.mxu1 %v1568_v0 }
  0x54   :  { %986 = vmatprep.mubr.f32.mxu0 %v48_v56 }
  0x55   :  { %987 = vmatmul.mubr.f32.gmra.mrb[6].mxu0 %v49_v57 }
  0x56   :  { %1336 = vmatpush3.bf16.msra.mxu0 %v1632_v28  ;;  %1360 = vmatpush3.bf16.msra.mxu1 %v1632_v28 }
  0x57   :  { %1337 = vmatprep.subr.bf16.mxu0 %v1568_v0  ;;  %1361 = vmatprep.subr.bf16.mxu1 %v1568_v0 }
  0x58   :  { %1056 = vmatprep.mubr.msk.f32.mxu0 %vm1569_vm0, %v1570_v1 }
  0x5a   :  { %1339 = vmatpush3.bf16.msra.mxu0 %v1636_v34  ;;  %1363 = vmatpush3.bf16.msra.mxu1 %v1636_v34 }
  0x5b   :  { %1340 = vmatprep.subr.bf16.mxu0 %v1568_v0  ;;  %1364 = vmatprep.subr.bf16.mxu1 %v1568_v0 }
  0x5e   :  { %1342 = vmatpush3.bf16.msra.mxu0 %v1640_v40  ;;  %1366 = vmatpush3.bf16.msra.mxu1 %v1640_v40 }
  0x5f   :  { %1343 = vmatprep.subr.bf16.mxu0 %v1568_v0  ;;  %1367 = vmatprep.subr.bf16.mxu1 %v1568_v0 }
  0x62   :  { %1345 = vmatpush3.bf16.msra.mxu0 %v1644_v46  ;;  %1369 = vmatpush3.bf16.msra.mxu1 %v1644_v46 }
  0x63   :  { %1346 = vmatprep.subr.bf16.mxu0 %v1568_v0  ;;  %1370 = vmatprep.subr.bf16.mxu1 %v1568_v0 }
  0x66   :  { %1348 = vmatpush3.bf16.msra.mxu0 %v1648_v50  ;;  %1372 = vmatpush3.bf16.msra.mxu1 %v1648_v50 }
  0x67   :  { %1373 = vmatprep.subr.bf16.mxu0 %v1568_v0  ;;  %1397 = vmatprep.subr.bf16.mxu1 %v1568_v0 }
 0x11c   :  { %v979_v58 = vpop.f32.mrb[0].mxu0  ;;  %v253_v59 = vpop.f32.mrb[0].mxu1 }
 0x11d   :  { %v132_v60 = vpop.f32.mrb[1].mxu0  ;;  %v1023_v61 = vpop.f32.mrb[1].mxu1 }
 0x11e   :  { %v257_v62 = vadd.f32 %v253_v59, %v132_v60 }
 0x120   :  { %1500 = vtanh.f32 %v257_v62  ;;  %v982_v3 = vpop.f32.mrb[2].mxu0 }
 0x121   :  { %v142_v4 = vpop.f32.mrb[3].mxu0 }
 0x124   :  { %v1733_v5 = vpop.f32.mrb[4].mxu0 }
 0x125   :  { %v1735_v6 = vpop.f32.mrb[5].mxu0 }
 0x128   :  { %v1737_v7 = vpop.f32.mrb[6].mxu0 }
 0x129   :  { %v1739_v8 = vpop.f32.mrb[7].mxu0 }
 0x12a   :  { %v1501_v63 = vpop.eup %1500 }
 0x12b   :  { %v259_v2 = vmul.f32 10.0, %v1501_v63  ;;  %1057 = vmatmul.mubr.f32.vlgmr.msra.gmra.mrb[8].mxu0 %v1501_v63 }
 0x12c   :  { %1375 = vmatpush3.bf16.msra.mxu0 %v1618_v9  ;;  %1126 = vmatprep.mubr.msk.f32.mxu0 %vm1569_vm0, %v1570_v1 }
 0x12d   :  { %260 = vst [vmem:[%s1839_s3] sm:$0xff] %v259_v2  ;;  %1376 = vmatprep.subr.bf16.mxu0 %v1568_v0 }
 0x130   :  { %1378 = vmatpush3.bf16.msra.mxu0 %v1621_v15 }
 0x131   :  { %1379 = vmatprep.subr.bf16.mxu0 %v1568_v0 }
 0x134   :  { %1381 = vmatpush3.bf16.msra.mxu0 %v1625_v21 }
 0x135   :  { %1382 = vmatprep.subr.bf16.mxu0 %v1568_v0 }
 0x138   :  { %1384 = vmatpush3.bf16.msra.mxu0 %v1632_v28 }
 0x139   :  { %1385 = vmatprep.subr.bf16.mxu0 %v1568_v0 }
 0x13c   :  { %1387 = vmatpush3.bf16.msra.mxu0 %v1636_v34 }
 0x13d   :  { %1388 = vmatprep.subr.bf16.mxu0 %v1568_v0 }
 0x140   :  { %1390 = vmatpush3.bf16.msra.mxu0 %v1640_v40 }
 0x141   :  { %1391 = vmatprep.subr.bf16.mxu0 %v1568_v0 }
 0x144   :  { %1393 = vmatpush3.bf16.msra.mxu0 %v1644_v46 }
 0x145   :  { %1394 = vmatprep.subr.bf16.mxu0 %v1568_v0 }
 0x148   :  { %1396 = vmatpush3.bf16.msra.mxu0 %v1648_v50 }
 0x149   :  { %1421 = vmatprep.subr.bf16.mxu0 %v1568_v0 }
 0x1fe   :  { %v327_v10 = vpop.f32.mrb[8].mxu0 }
 0x1ff   :  { %v331_v11 = vadd.f32 %v979_v58, %v327_v10  ;;  %v1058_v12 = vpop.f32.mrb[9].mxu0 }
 0x201   :  { %1502 = vtanh.f32 %v331_v11 }
 0x20b   :  { %v1503_v13 = vpop.eup %1502 }
 0x20c   :  { %v333_v14 = vmul.f32 10.0, %v1503_v13  ;;  %1092 = vmatmul.mubr.f32.vlgmr.msra.gmra.mrb[2].mxu1 %v1503_v13 }
 0x20d   :  { %1399 = vmatpush3.bf16.msra.mxu1 %v1618_v9  ;;  %1161 = vmatprep.mubr.msk.f32.mxu1 %vm1569_vm0, %v1570_v1 }
 0x20e   :  { %334 = vst [vmem:[%s1839_s3 + $0x8] sm:$0xff] %v333_v14  ;;  %1400 = vmatprep.subr.bf16.mxu1 %v1568_v0 }
 0x211   :  { %1402 = vmatpush3.bf16.msra.mxu1 %v1621_v15 }
 0x212   :  { %1403 = vmatprep.subr.bf16.mxu1 %v1568_v0 }
 0x215   :  { %1405 = vmatpush3.bf16.msra.mxu1 %v1625_v21 }
 0x216   :  { %1406 = vmatprep.subr.bf16.mxu1 %v1568_v0 }
 0x219   :  { %1408 = vmatpush3.bf16.msra.mxu1 %v1632_v28 }
 0x21a   :  { %1409 = vmatprep.subr.bf16.mxu1 %v1568_v0 }
 0x21d   :  { %1411 = vmatpush3.bf16.msra.mxu1 %v1636_v34 }
 0x21e   :  { %1412 = vmatprep.subr.bf16.mxu1 %v1568_v0 }
 0x221   :  { %1414 = vmatpush3.bf16.msra.mxu1 %v1640_v40 }
 0x222   :  { %1415 = vmatprep.subr.bf16.mxu1 %v1568_v0 }
 0x225   :  { %1417 = vmatpush3.bf16.msra.mxu1 %v1644_v46 }
 0x226   :  { %1418 = vmatprep.subr.bf16.mxu1 %v1568_v0 }
 0x229   :  { %1420 = vmatpush3.bf16.msra.mxu1 %v1648_v50 }
 0x22a   :  { %1445 = vmatprep.subr.bf16.mxu1 %v1568_v0 }
 0x2df   :  { %v401_v16 = vpop.f32.mrb[2].mxu1 }
 0x2e0   :  { %v405_v17 = vadd.f32 %v401_v16, %v142_v4  ;;  %v1093_v18 = vpop.f32.mrb[3].mxu1 }
 0x2e2   :  { %1504 = vtanh.f32 %v405_v17 }
 0x2ec   :  { %v1505_v19 = vpop.eup %1504 }
 0x2ed   :  { %v407_v20 = vmul.f32 10.0, %v1505_v19  ;;  %1127 = vmatmul.mubr.f32.vlgmr.msra.gmra.mrb[10].mxu0 %v1505_v19 }
 0x2ee   :  { %1423 = vmatpush3.bf16.msra.mxu0 %v1618_v9  ;;  %1196 = vmatprep.mubr.msk.f32.mxu0 %vm1569_vm0, %v1570_v1 }
 0x2ef   :  { %408 = vst [vmem:[%s1839_s3 + $0x10] sm:$0xff] %v407_v20  ;;  %1424 = vmatprep.subr.bf16.mxu0 %v1568_v0 }
 0x2f2   :  { %1426 = vmatpush3.bf16.msra.mxu0 %v1621_v15 }
 0x2f3   :  { %1427 = vmatprep.subr.bf16.mxu0 %v1568_v0 }
 0x2f6   :  { %1429 = vmatpush3.bf16.msra.mxu0 %v1625_v21 }
 0x2f7   :  { %1430 = vmatprep.subr.bf16.mxu0 %v1568_v0 }
 0x2fa   :  { %1432 = vmatpush3.bf16.msra.mxu0 %v1632_v28 }
 0x2fb   :  { %1433 = vmatprep.subr.bf16.mxu0 %v1568_v0 }
 0x2fe   :  { %1435 = vmatpush3.bf16.msra.mxu0 %v1636_v34 }
 0x2ff   :  { %1436 = vmatprep.subr.bf16.mxu0 %v1568_v0 }
 0x302   :  { %1438 = vmatpush3.bf16.msra.mxu0 %v1640_v40 }
 0x303   :  { %1439 = vmatprep.subr.bf16.mxu0 %v1568_v0 }
 0x306   :  { %1441 = vmatpush3.bf16.msra.mxu0 %v1644_v46 }
 0x307   :  { %1442 = vmatprep.subr.bf16.mxu0 %v1568_v0 }
 0x30a   :  { %1444 = vmatpush3.bf16.msra.mxu0 %v1648_v50 }
 0x30b   :  { %1469 = vmatprep.subr.bf16.mxu0 %v1568_v0 }
 0x3c0   :  { %v475_v22 = vpop.f32.mrb[10].mxu0 }
 0x3c1   :  { %v479_v23 = vadd.f32 %v982_v3, %v475_v22  ;;  %v1128_v24 = vpop.f32.mrb[11].mxu0 }
 0x3c3   :  { %1506 = vtanh.f32 %v479_v23 }
 0x3cd   :  { %v1507_v25 = vpop.eup %1506 }
 0x3ce   :  { %v481_v26 = vmul.f32 10.0, %v1507_v25  ;;  %1162 = vmatmul.mubr.f32.vlgmr.msra.gmra.mrb[4].mxu1 %v1507_v25 }
 0x3cf   :  { %1447 = vmatpush3.bf16.msra.mxu1 %v1618_v9  ;;  %1231 = vmatprep.mubr.msk.f32.mxu1 %vm1569_vm0, %v1570_v1 }
 0x3d0   :  { %482 = vst [vmem:[%s1839_s3 + $0x18] sm:$0xff] %v481_v26  ;;  %1448 = vmatprep.subr.bf16.mxu1 %v1568_v0 }
 0x3d3   :  { %1450 = vmatpush3.bf16.msra.mxu1 %v1621_v15 }
 0x3d4   :  { %1451 = vmatprep.subr.bf16.mxu1 %v1568_v0 }
 0x3d7   :  { %1453 = vmatpush3.bf16.msra.mxu1 %v1625_v21 }
 0x3d8   :  { %1454 = vmatprep.subr.bf16.mxu1 %v1568_v0 }
 0x3db   :  { %1456 = vmatpush3.bf16.msra.mxu1 %v1632_v28 }
 0x3dc   :  { %1457 = vmatprep.subr.bf16.mxu1 %v1568_v0 }
 0x3df   :  { %1459 = vmatpush3.bf16.msra.mxu1 %v1636_v34 }
 0x3e0   :  { %1460 = vmatprep.subr.bf16.mxu1 %v1568_v0 }
 0x3e3   :  { %1462 = vmatpush3.bf16.msra.mxu1 %v1640_v40 }
 0x3e4   :  { %1463 = vmatprep.subr.bf16.mxu1 %v1568_v0 }
 0x3e7   :  { %1465 = vmatpush3.bf16.msra.mxu1 %v1644_v46 }
 0x3e8   :  { %1466 = vmatprep.subr.bf16.mxu1 %v1568_v0 }
 0x3eb   :  { %1468 = vmatpush3.bf16.msra.mxu1 %v1648_v50 }
 0x4a1   :  { %v549_v27 = vpop.f32.mrb[4].mxu1 }
 0x4a2   :  { %v553_v29 = vadd.f32 %v549_v27, %v1735_v6  ;;  %v1163_v30 = vpop.f32.mrb[5].mxu1 }
 0x4a4   :  { %1508 = vtanh.f32 %v553_v29 }
 0x4ae   :  { %v1509_v31 = vpop.eup %1508 }
 0x4af   :  { %v555_v32 = vmul.f32 10.0, %v1509_v31  ;;  %1197 = vmatmul.mubr.f32.vlgmr.msra.gmra.mrb[12].mxu0 %v1509_v31 }
 0x4b0   :  { %1471 = vmatpush3.bf16.msra.mxu0 %v1618_v9  ;;  %1266 = vmatprep.mubr.msk.f32.mxu0 %vm1569_vm0, %v1570_v1 }
 0x4b1   :  { %556 = vst [vmem:[%s1839_s3 + $0x20] sm:$0xff] %v555_v32  ;;  %1472 = vmatprep.subr.bf16.mxu0 %v1568_v0 }
 0x4b4   :  { %1474 = vmatpush3.bf16.msra.mxu0 %v1621_v15 }
 0x4b5   :  { %1475 = vmatprep.subr.bf16.mxu0 %v1568_v0 }
 0x4b8   :  { %1477 = vmatpush3.bf16.msra.mxu0 %v1625_v21 }
 0x4b9   :  { %1478 = vmatprep.subr.bf16.mxu0 %v1568_v0 }
 0x4bc   :  { %1480 = vmatpush3.bf16.msra.mxu0 %v1632_v28 }
 0x4bd   :  { %1481 = vmatprep.subr.bf16.mxu0 %v1568_v0 }
 0x4c0   :  { %1483 = vmatpush3.bf16.msra.mxu0 %v1636_v34 }
 0x4c1   :  { %1484 = vmatprep.subr.bf16.mxu0 %v1568_v0 }
 0x4c4   :  { %1486 = vmatpush3.bf16.msra.mxu0 %v1640_v40 }
 0x4c5   :  { %1487 = vmatprep.subr.bf16.mxu0 %v1568_v0 }
 0x4c8   :  { %1489 = vmatpush3.bf16.msra.mxu0 %v1644_v46 }
 0x4c9   :  { %1490 = vmatprep.subr.bf16.mxu0 %v1568_v0 }
 0x4cc   :  { %1492 = vmatpush3.bf16.msra.mxu0 %v1648_v50 }
 0x582   :  { %v623_v1 = vpop.f32.mrb[12].mxu0 }
 0x583   :  { %v627_v9 = vadd.f32 %v1733_v5, %v623_v1  ;;  %v1198_v15 = vpop.f32.mrb[13].mxu0 }
 0x585   :  { %1510 = vtanh.f32 %v627_v9 }
 0x58f   :  { %v1511_v21 = vpop.eup %1510 }
 0x590   :  { %v629_v28 = vmul.f32 10.0, %v1511_v21  ;;  %1232 = vmatmul.mubr.f32.vlgmr.msra.gmra.mrb[6].mxu1 %v1511_v21 }
 0x592   :  { %630 = vst [vmem:[%s1839_s3 + $0x28] sm:$0xff] %v629_v28 }
 0x663   :  { %v697_v33 = vpop.f32.mrb[6].mxu1 }
 0x664   :  { %v701_v34 = vadd.f32 %v697_v33, %v1739_v8  ;;  %v1233_v35 = vpop.f32.mrb[7].mxu1 }
 0x666   :  { %1512 = vtanh.f32 %v701_v34 }
 0x670   :  { %v1513_v0 = vpop.eup %1512 }
 0x671   :  { %v703_v36 = vmul.f32 10.0, %v1513_v0  ;;  %1267 = vmatmul.mubr.f32.vlgmr.msra.gmra.mrb[14].mxu0 %v1513_v0 }
 0x673   :  { %704 = vst [vmem:[%s1839_s3 + $0x30] sm:$0xff] %v703_v36 }
 0x744   :  { %v771_v37 = vpop.f32.mrb[14].mxu0 }
 0x745   :  { %v775_v38 = vadd.f32 %v1737_v7, %v771_v37  ;;  %v1268_v39 = vpop.f32.mrb[15].mxu0 }
 0x747   :  { %1514 = vtanh.f32 %v775_v38 }
 0x751   :  { %v1515_v40 = vpop.eup %1514 }
 0x752   :  { %v777_v41 = vmul.f32 10.0, %v1515_v40 }
 0x754   :  { %778 = vst [vmem:[%s1839_s3 + $0x38] sm:$0xff] %v777_v41 }
 0x755   :  { %783 = vsyncpa [#allocation3], 1 }
 0x756   :  { %784 = vsyncpa [#allocation5], 1 }

</bundles_post_ra>
